<compile_context>
chip_gen: v5e
topology: v5e:2x2
jax: 0.10.0
libtpu: 0.0.40
codegen_flags: <defaults>
</compile_context>

<pallas_src>
import functools

import jax
import jax.numpy as jnp
from jax.experimental import pallas as pl
from jax.experimental.pallas import tpu as pltpu

KSIZE = 3  # 3x3 conv, padding=1 ("same")


def _skipblock_main_kernel(x_ref, w_ref, b_ref, m_ref, o_ref, xp_ref, *, H, W):
    """Conv3x3(+bias)+ReLU ("main" branch) for one batch element, flat-spatial layout.

    x_ref : (1, Cin, H*W)        input image, channels on sublanes, pixels on lanes
    w_ref : (Cout, 9*Cin)        conv weights, columns ordered (ky, kx, ci)
    b_ref : (Cout, 1)            conv bias (f32)
    m_ref : (2, H*W)             edge masks: row0 = "x-1 valid", row1 = "x+1 valid"
    o_ref : (1, Cout, H*W)       relu(conv(x) + b)      -- lane-dense (H*W lanes)
    xp_ref: (Cin, (H+2)*W + 2)   VMEM scratch: flat, row-padded image with zero halo
    """
    Cin = x_ref.shape[1]
    HW = H * W
    base = W + 1                       # flat index of image pixel (0, 0) inside xp
    pad_len = xp_ref.shape[1]          # (H+2)*W + 2

    # ---- build the zero halo in VMEM (padding fused into the kernel) --------------
    xp_ref[:, 0:base] = jnp.zeros((Cin, base), xp_ref.dtype)
    xp_ref[:, base + HW:pad_len] = jnp.zeros((Cin, pad_len - base - HW), xp_ref.dtype)
    xp_ref[:, base:base + HW] = x_ref[0]

    not_left = m_ref[0:1, :]           # zero where the tap would read column x-1 < 0
    not_right = m_ref[1:2, :]          # zero where the tap would read column x+1 >= W

    # ---- one im2col-style operand: 9 shifted planes per input channel -------------
    # output pixel p (flat) needs padded pixel  p + ky*W + kx  for tap (ky, kx).
    planes = []
    for ky in range(KSIZE):
        for kx in range(KSIZE):
            off = ky * W + kx
            p = xp_ref[:, off:off + HW]            # (Cin, H*W), contiguous lane slice
            if kx == 0:
                p = p * not_left
            elif kx == KSIZE - 1:
                p = p * not_right
            planes.append(p)
    patches = jnp.concatenate(planes, axis=0)      # (9*Cin, H*W)

    # ---- single MXU matmul (K = 9*Cin), f32 accumulation ---------------------------
    acc = jnp.dot(w_ref[...], patches,
                  preferred_element_type=jnp.float32)   # (Cout, H*W)
    acc = acc + b_ref[...]                              # bias broadcast over lanes
    o_ref[0] = jnp.maximum(acc, 0.0).astype(o_ref.dtype)


def skip_block(x_nchw, w_oihw, bias, *, compute_dtype=jnp.float32):
    """SkipBlock forward: concat([relu(conv3x3(x) + b), x], axis=1), NCHW in/out.

    x_nchw : (B, Cin, H, W) float32
    w_oihw : (Cout, Cin, 3, 3)   (PyTorch Conv2d weight layout)
    bias   : (Cout,)
    """
    B, Cin, H, W = x_nchw.shape
    Cout = w_oihw.shape[0]
    HW = H * W
    pad_len = (H + 2) * W + 2   # 1 leading zero + (H+2) rows of W + 1 trailing zero

    # Free (layout-preserving) reshapes + host-side weight repack. No transposes of x.
    x_flat = x_nchw.reshape(B, Cin, HW)
    w_mat = jnp.transpose(w_oihw, (0, 2, 3, 1)).reshape(Cout, KSIZE * KSIZE * Cin)
    b_col = bias.reshape(Cout, 1).astype(jnp.float32)

    # Tiny constant edge masks (avoid in-kernel integer mod; XLA constant-folds these).
    col = jnp.arange(HW, dtype=jnp.int32) % W
    edge_masks = jnp.stack([(col != 0), (col != W - 1)], axis=0).astype(compute_dtype)

    x_k = x_flat.astype(compute_dtype)   # optionally bf16 on v6e/v7x (halves DMA bytes)
    w_k = w_mat.astype(compute_dtype)

    kernel = functools.partial(_skipblock_main_kernel, H=H, W=W)

    main_flat = pl.pallas_call(
        kernel,
        out_shape=jax.ShapeDtypeStruct((B, Cout, HW), jnp.float32),
        grid_spec=pltpu.PrefetchScalarGridSpec(
            num_scalar_prefetch=0,
            grid=(B,),
            in_specs=[
                pl.BlockSpec((1, Cin, HW), lambda b: (b, 0, 0)),
                pl.BlockSpec((Cout, KSIZE * KSIZE * Cin), lambda b: (0, 0)),
                pl.BlockSpec((Cout, 1), lambda b: (0, 0)),
                pl.BlockSpec((2, HW), lambda b: (0, 0)),
            ],
            out_specs=pl.BlockSpec((1, Cout, HW), lambda b: (b, 0, 0)),
            scratch_shapes=[pltpu.VMEM((Cin, pad_len), compute_dtype)],
        ),
        compiler_params=pltpu.CompilerParams(
            dimension_semantics=("parallel",),
            vmem_limit_bytes=32 * 1024 * 1024,
        ),
    )(x_k, w_k, b_col, edge_masks)

    # Identity skip branch: plain XLA channel concat (kept off the kernel's vector
    # load/store slots), then a free last-dim split back to (H, W).
    out_flat = jnp.concatenate([main_flat, x_flat], axis=1)     # (B, Cout+Cin, H*W)
    return out_flat.reshape(B, Cout + Cin, H, W)


def _reference(x_nchw, w_oihw, bias):
    """Pure-JAX reference mirroring the PyTorch forward (NCHW throughout)."""
    conv = jax.lax.conv_general_dilated(
        x_nchw, w_oihw, window_strides=(1, 1), padding="SAME",
        dimension_numbers=("NCHW", "OIHW", "NCHW"),
        precision=jax.lax.Precision.HIGHEST)
    main = jnp.maximum(conv + bias.reshape(1, -1, 1, 1), 0.0)
    return jnp.concatenate([main, x_nchw], axis=1)


if __name__ == "__main__":
    B, Cin, H, W = 2, 4, 16, 16
    Cout = 8

    key = jax.random.PRNGKey(0)
    kx, kw, kb = jax.random.split(key, 3)
    x = jax.random.normal(kx, (B, Cin, H, W), dtype=jnp.float32)
    # Conv2d(Cin, Cout, 3, padding=1) parameters in PyTorch OIHW layout.
    w = jax.random.normal(kw, (Cout, Cin, KSIZE, KSIZE), dtype=jnp.float32) * 0.1
    b = jax.random.normal(kb, (Cout,), dtype=jnp.float32) * 0.1

    fwd = jax.jit(skip_block)
    out = jax.block_until_ready(fwd(x, w, b))
    ref = jax.block_until_ready(_reference(x, w, b))

    assert out.shape == (B, Cout + Cin, H, W)
    assert jnp.allclose(out, ref, atol=1e-4, rtol=1e-4), \
        float(jnp.max(jnp.abs(out - ref)))

    print("KERNEL_OK")
</pallas_src>

<mosaic_0001>
module attributes {stable_mosaic.version = 11 : i64} {
  func.func @_skipblock_main_kernel(%arg0: i32, %arg1: memref<1x4x256xf32, #tpu.memory_space<vmem>>, %arg2: memref<8x36xf32, #tpu.memory_space<vmem>>, %arg3: memref<8x1xf32, #tpu.memory_space<vmem>>, %arg4: memref<2x256xf32, #tpu.memory_space<vmem>>, %arg5: memref<1x8x256xf32, #tpu.memory_space<vmem>>, %arg6: memref<4x290xf32, #tpu.memory_space<vmem>>) attributes {dimension_semantics = [#tpu.dimension_semantics<parallel>], iteration_bounds = array<i64: 2>, scalar_prefetch = 0 : i64, scratch_operands = 1 : i64, tpu.core_type = #tpu.core_type<tc>, window_params = [{transform_indices = @transform_0, window_bounds = array<i64: 1, 4, 256>}, {pipeline_mode = #tpu.pipeline_mode<synchronous>, transform_indices = @transform_1, window_bounds = array<i64: 8, 36>}, {pipeline_mode = #tpu.pipeline_mode<synchronous>, transform_indices = @transform_2, window_bounds = array<i64: 8, 1>}, {pipeline_mode = #tpu.pipeline_mode<synchronous>, transform_indices = @transform_3, window_bounds = array<i64: 2, 256>}, {transform_indices = @transform_4, window_bounds = array<i64: 1, 8, 256>}]} {
    %cst = arith.constant 0.000000e+00 : f32
    %0 = vector.broadcast %cst : f32 to vector<4x17xf32>
    %c0 = arith.constant 0 : index
    %c0_0 = arith.constant 0 : index
    %1 = vector.load %arg6[%c0, %c0_0] : memref<4x290xf32, #tpu.memory_space<vmem>>, vector<4x17xf32>
    tpu.vector_store %arg6[%c0, %c0_0], %0 {strides = array<i32>} : memref<4x290xf32, #tpu.memory_space<vmem>>, vector<4x17xf32>,
    %cst_1 = arith.constant 0.000000e+00 : f32
    %2 = vector.broadcast %cst_1 : f32 to vector<4x17xf32>
    %c0_2 = arith.constant 0 : index
    %c273 = arith.constant 273 : index
    %3 = vector.load %arg6[%c0_2, %c273] : memref<4x290xf32, #tpu.memory_space<vmem>>, vector<4x17xf32>
    tpu.vector_store %arg6[%c0_2, %c273], %2 {strides = array<i32>} : memref<4x290xf32, #tpu.memory_space<vmem>>, vector<4x17xf32>,
    %c0_3 = arith.constant 0 : index
    %c0_4 = arith.constant 0 : index
    %c0_5 = arith.constant 0 : index
    %4 = vector.load %arg1[%c0_3, %c0_4, %c0_5] : memref<1x4x256xf32, #tpu.memory_space<vmem>>, vector<1x4x256xf32>
    %5 = vector.shape_cast %4 : vector<1x4x256xf32> to vector<4x256xf32>
    %c0_6 = arith.constant 0 : index
    %c17 = arith.constant 17 : index
    %6 = vector.load %arg6[%c0_6, %c17] : memref<4x290xf32, #tpu.memory_space<vmem>>, vector<4x256xf32>
    tpu.vector_store %arg6[%c0_6, %c17], %5 {strides = array<i32>} : memref<4x290xf32, #tpu.memory_space<vmem>>, vector<4x256xf32>,
    %c0_7 = arith.constant 0 : index
    %c0_8 = arith.constant 0 : index
    %7 = vector.load %arg4[%c0_7, %c0_8] : memref<2x256xf32, #tpu.memory_space<vmem>>, vector<1x256xf32>
    %c1 = arith.constant 1 : index
    %c0_9 = arith.constant 0 : index
    %8 = vector.load %arg4[%c1, %c0_9] : memref<2x256xf32, #tpu.memory_space<vmem>>, vector<1x256xf32>
    %c0_10 = arith.constant 0 : index
    %c0_11 = arith.constant 0 : index
    %9 = vector.load %arg6[%c0_10, %c0_11] : memref<4x290xf32, #tpu.memory_space<vmem>>, vector<4x256xf32>
    %10 = vector.broadcast %7 : vector<1x256xf32> to vector<4x256xf32>
    %11 = arith.mulf %9, %10 : vector<4x256xf32>
    %c0_12 = arith.constant 0 : index
    %c1_13 = arith.constant 1 : index
    %12 = vector.load %arg6[%c0_12, %c1_13] : memref<4x290xf32, #tpu.memory_space<vmem>>, vector<4x256xf32>
    %c0_14 = arith.constant 0 : index
    %c2 = arith.constant 2 : index
    %13 = vector.load %arg6[%c0_14, %c2] : memref<4x290xf32, #tpu.memory_space<vmem>>, vector<4x256xf32>
    %14 = vector.broadcast %8 : vector<1x256xf32> to vector<4x256xf32>
    %15 = arith.mulf %13, %14 : vector<4x256xf32>
    %c0_15 = arith.constant 0 : index
    %c16 = arith.constant 16 : index
    %16 = vector.load %arg6[%c0_15, %c16] : memref<4x290xf32, #tpu.memory_space<vmem>>, vector<4x256xf32>
    %17 = vector.broadcast %7 : vector<1x256xf32> to vector<4x256xf32>
    %18 = arith.mulf %16, %17 : vector<4x256xf32>
    %c0_16 = arith.constant 0 : index
    %c17_17 = arith.constant 17 : index
    %19 = vector.load %arg6[%c0_16, %c17_17] : memref<4x290xf32, #tpu.memory_space<vmem>>, vector<4x256xf32>
    %c0_18 = arith.constant 0 : index
    %c18 = arith.constant 18 : index
    %20 = vector.load %arg6[%c0_18, %c18] : memref<4x290xf32, #tpu.memory_space<vmem>>, vector<4x256xf32>
    %21 = vector.broadcast %8 : vector<1x256xf32> to vector<4x256xf32>
    %22 = arith.mulf %20, %21 : vector<4x256xf32>
    %c0_19 = arith.constant 0 : index
    %c32 = arith.constant 32 : index
    %23 = vector.load %arg6[%c0_19, %c32] : memref<4x290xf32, #tpu.memory_space<vmem>>, vector<4x256xf32>
    %24 = vector.broadcast %7 : vector<1x256xf32> to vector<4x256xf32>
    %25 = arith.mulf %23, %24 : vector<4x256xf32>
    %c0_20 = arith.constant 0 : index
    %c33 = arith.constant 33 : index
    %26 = vector.load %arg6[%c0_20, %c33] : memref<4x290xf32, #tpu.memory_space<vmem>>, vector<4x256xf32>
    %c0_21 = arith.constant 0 : index
    %c34 = arith.constant 34 : index
    %27 = vector.load %arg6[%c0_21, %c34] : memref<4x290xf32, #tpu.memory_space<vmem>>, vector<4x256xf32>
    %28 = vector.broadcast %8 : vector<1x256xf32> to vector<4x256xf32>
    %29 = arith.mulf %27, %28 : vector<4x256xf32>
    %30 = tpu.concatenate %11, %12, %15, %18, %19, %22, %25, %26, %29 in 0 : vector<4x256xf32>, vector<4x256xf32>, vector<4x256xf32>, vector<4x256xf32>, vector<4x256xf32>, vector<4x256xf32>, vector<4x256xf32>, vector<4x256xf32>, vector<4x256xf32> -> vector<36x256xf32>
    %c0_22 = arith.constant 0 : index
    %c0_23 = arith.constant 0 : index
    %31 = vector.load %arg2[%c0_22, %c0_23] : memref<8x36xf32, #tpu.memory_space<vmem>>, vector<8x36xf32>
    %cst_24 = arith.constant dense<0.000000e+00> : vector<8x256xf32>
    %32 = tpu.matmul %31, %30, %cst_24 {dimension_numbers = #tpu.dot_dimension_numbers<[1], [0], [0], [1], [0, 0, 1, 1], [], []>} : vector<8x36xf32>, vector<36x256xf32>, vector<8x256xf32> -> vector<8x256xf32>
    %c0_25 = arith.constant 0 : index
    %c0_26 = arith.constant 0 : index
    %33 = vector.load %arg3[%c0_25, %c0_26] : memref<8x1xf32, #tpu.memory_space<vmem>>, vector<8x1xf32>
    %34 = vector.broadcast %33 : vector<8x1xf32> to vector<8x256xf32>
    %35 = arith.addf %32, %34 : vector<8x256xf32>
    %cst_27 = arith.constant 0.000000e+00 : f32
    %36 = vector.broadcast %cst_27 : f32 to vector<8x256xf32>
    %37 = arith.maximumf %35, %36 : vector<8x256xf32>
    %c0_28 = arith.constant 0 : index
    %c0_29 = arith.constant 0 : index
    %c0_30 = arith.constant 0 : index
    %38 = vector.load %arg5[%c0_28, %c0_29, %c0_30] : memref<1x8x256xf32, #tpu.memory_space<vmem>>, vector<1x8x256xf32>
    %39 = vector.shape_cast %38 : vector<1x8x256xf32> to vector<8x256xf32>
    %40 = vector.shape_cast %37 : vector<8x256xf32> to vector<1x8x256xf32>
    tpu.vector_store %arg5[%c0_28, %c0_29, %c0_30], %40 {strides = array<i32>} : memref<1x8x256xf32, #tpu.memory_space<vmem>>, vector<1x8x256xf32>,
    return
  }
  func.func @transform_0(%arg0: i32) -> (i32, i32, i32) {
    %c0_i32 = arith.constant 0 : i32
    %c0_i32_0 = arith.constant 0 : i32
    %c0_i32_1 = arith.constant 0 : i32
    return %arg0, %c0_i32, %c0_i32_0 : i32, i32, i32
  }
  func.func @transform_1(%arg0: i32) -> (i32, i32) {
    %c0_i32 = arith.constant 0 : i32
    %c0_i32_0 = arith.constant 0 : i32
    %c0_i32_1 = arith.constant 0 : i32
    return %c0_i32, %c0_i32_0 : i32, i32
  }
  func.func @transform_2(%arg0: i32) -> (i32, i32) {
    %c0_i32 = arith.constant 0 : i32
    %c0_i32_0 = arith.constant 0 : i32
    %c0_i32_1 = arith.constant 0 : i32
    return %c0_i32, %c0_i32_0 : i32, i32
  }
  func.func @transform_3(%arg0: i32) -> (i32, i32) {
    %c0_i32 = arith.constant 0 : i32
    %c0_i32_0 = arith.constant 0 : i32
    %c0_i32_1 = arith.constant 0 : i32
    return %c0_i32, %c0_i32_0 : i32, i32
  }
  func.func @transform_4(%arg0: i32) -> (i32, i32, i32) {
    %c0_i32 = arith.constant 0 : i32
    %c0_i32_0 = arith.constant 0 : i32
    %c0_i32_1 = arith.constant 0 : i32
    return %arg0, %c0_i32, %c0_i32_0 : i32, i32, i32
  }
}

</mosaic_0001>

<bundles_post_ra>
// kernel: skip_block.1
= control target key start
LH: loop header
LB: loop body
LE: loop exit
PB: predicated region body
PF: predicated region fallthrough
CT: control target
= control target key end

     0   :  { %s685_s15 = smov 0   ;;  %s790_s0 = inlined_call_operand.vmem [shape: f32[2,4,256], index: 0, kind: input, shape index: {}]   ;;  %s791_s1 = inlined_call_operand.vmem [shape: f32[8,36], index: 1, kind: input, shape index: {}]   ;;  %s792_s2 = inlined_call_operand.vmem [shape: f32[8,1], index: 2, kind: input, shape index: {}]   ;;  %s793_s3 = inlined_call_operand.vmem [shape: f32[2,256], index: 3, kind: input, shape index: {}]   ;;  %s794_s4 = inlined_call_operand.vmem [shape: f32[2,8,256], index: 4, kind: output, shape index: {}]  }
   0x1 LB: > { %s557_s16 = sadd.s32 4294967295, %s642_s15   ;;  %p561_p0 = scmp.ge.s32.totalorder %s642_s15, 1  ;;  %s642_s15 = sphi %s685_s15, %s14_s15  }
   0x2   : > { %p162_p1 = scmp.lt.s32.totalorder %s642_s15, 3 }
   0x4   : > { %p163_p2 = pnand %p561_p0, %p162_p1 }
   0x5   : > { %p188_p3 = scmp.lt.s32.totalorder (!%p163_p2), %s557_s16, 1  ;;  %s644_s25 = smov (!%p163_p2), 16  }
   0x6   : > { %166 = sbr.rel (%p163_p2) target bundleno = 478 (0x1de), region = 36  ;;  %s645_s26 = smov (!%p163_p2), 32  }
   0x7   : > { %s646_s27 = smov (!%p163_p2), 17   ;;  %s647_s28 = smov (!%p163_p2), 18  }
   0x8   : > { %s648_s29 = smov (!%p163_p2), 34   ;;  %s649_s30 = smov (!%p163_p2), 2  }
   0x9   : > { %s651_s5 = smov (!%p163_p2), 126   ;;  %s652_s6 = smov (!%p163_p2), 111  }
   0xa   : > { %s653_s7 = smov (!%p163_p2), 112   ;;  %s654_s8 = smov (!%p163_p2), 110  }
   0xb   : > { %v216_v0 = vld [vmem:[%s793_s3] ss:$2 sm:$0x3]  ;;  %v566_v3 = vld [vmem:[%s793_s3 + $0x1] ss:$2 sm:$0x3] }
   0xc   : > { %v221_v1 = vperm.slane %v216_v0, 0  ;;  %v222_v2 = vperm.slane %v216_v0, 1  ;;  %vm224_vm0 = vcmask 1043456   ;;  %s796_s16 = smov (!%p188_p3, %s557_s16), 1  ;;  %v231_v5 = vperm.slane %v566_v3, 1  ;;  %s655_s9 = smov 96  }
   0xd   : > { %s573_s21 = sshll.u32 %s796_s16, 3  ;;  %v230_v8 = vperm.slane %v566_v3, 0  ;;  %vm200_vm1 = vcmask 273544   ;;  %vm198_vm2 = vcmask 134144   ;;  %v650_v11 = vmov 0.0   ;;  %s656_s10 = smov 95  }
   0xe   : > { %v223_v4 = vrot.slane %v222_v2, 4  ;;  %s192_s24 = scalar_lea.vmem %s790_s0, %s573_s21  ;;  %v232_v9 = vrot.slane %v231_v5, 4  ;;  %201 = vst.msk [vmem:[#allocation2 + $0x8] sm:$0xf] %vm200_vm1, %v650_v11  ;;  %vm211_vm3 = vcmask 1043592   ;;  %vm212_vm4 = vcmask 1047556  }
   0xf   : > { %v202_v7 = vld [vmem:[%s192_s24] sm:$0xff]  ;;  %199 = vst.msk [vmem:[#allocation2] sm:$0xf] %vm198_vm2, %v650_v11  ;;  %vm207_vm5 = vcmask 138240   ;;  %vm213_vm6 = vmor %vm212_vm4, %vm211_vm3  ;;  %vm237_vm7 = vcmask 15360   ;;  %vm246_vm8 = vcmask 130048  }
  0x10   : > { %v225_v6 = vsel %vm224_vm0, %v221_v1, %v223_v4  ;;  %204 = vrot.lane.b32.xlu0 %v202_v7, %s646_s27  ;;  %v233_v10 = vsel %vm224_vm0, %v230_v8, %v232_v9  ;;  %vm255_vm9 = vcmask 146432   ;;  %vm264_vm10 = vcmask 261120   ;;  %s657_s11 = smov 94   ;;  %s658_s12 = smov 127  }
  0x11   : > { %243 = vrot.lane.b32.xlu1 %v225_v6, %s644_s25  ;;  %261 = vrot.lane.b32.xlu2 %v225_v6, %s645_s26  ;;  %vm273_vm11 = vcmask 277504   ;;  %vm395_vm12 = vcmask 785408   ;;  %vm432_vm13 = vcmask 769024   ;;  %vm356_vm14 = vcmask 908288   ;;  %s574_s19 = sshll.u32 %s796_s16, 4 }
  0x12   : > { %vm376_vm15 = vcmask 900096   ;;  %vm413_vm1 = vcmask 777216   ;;  %vm319_vm3 = vcmask 1031168   ;;  %vm300_vm4 = vcmask 1039360   ;;  %s197_s22 = scalar_lea.vmem %s794_s4, %s574_s19 }
  0x18   : > { %234 = vrot.lane.b32.xlu0 %v233_v10, %s649_s30 }
  0x19   : > { %252 = vrot.lane.b32.xlu1 %v233_v10, %s647_s28  ;;  %270 = vrot.lane.b32.xlu2 %v233_v10, %s648_s29 }
  0x6b   : > { %v262_v43 = vpop.permute.xlu2 %261 }
  0x6c   : > { %v263_v44 = vrot.slane %v262_v43, 4 }
  0x6e   : > { %v265_v54 = vsel %vm264_vm10, %v263_v44, %v262_v43 }
  0x73   : > { %v271_v55 = vpop.permute.xlu2 %270 }
  0x74   : > { %v272_v58 = vrot.slane %v271_v55, 4 }
  0x76   : > { %v274_v3 = vsel %vm273_vm11, %v272_v58, %v271_v55 }
  0x82   : > { %v205_v12 = vpop.permute.xlu0 %204 }
  0x83   : > { %v206_v13 = vrot.slane %v205_v12, 4  ;;  %v244_v22 = vpop.permute.xlu1 %243 }
  0x84   : > { %v245_v23 = vrot.slane %v244_v22, 4 }
  0x85   : > { %v208_v14 = vsel %vm207_vm5, %v206_v13, %v205_v12  ;;  %215 = vst.msk [vmem:[#allocation2 + $0x8] sm:$0xf] %vm198_vm2, %v206_v13  ;;  %vm339_vm2 = vcmask 916480   ;;  %vm450_vm5 = vcmask 293888  }
  0x86   : > { %214 = vst.msk [vmem:[#allocation2] sm:$0xff] %vm213_vm6, %v208_v14  ;;  %v247_v33 = vsel %vm246_vm8, %v245_v23, %v244_v22  ;;  %v659_v22 = vmov 0  }
  0x87   : > { %634 = vset.pattern.permute.xlu2 %v659_v22  ;;  %635 = vset.pattern.permute.xlu0 %v659_v22 }
  0x8a   : > { %v235_v16 = vpop.permute.xlu0 %234 }
  0x8b   : > { %v236_v19 = vrot.slane %v235_v16, 4  ;;  %v253_v34 = vpop.permute.xlu1 %252 }
  0x8c   : > { %v707_v15 = vld [vmem:[#allocation2 + $0x8] sm:$0xf]  ;;  %v254_v37 = vrot.slane %v253_v34, 4 }
  0x8d   : > { %v709_v17 = vld [vmem:[#allocation2] sm:$0xff]  ;;  %290 = vst [vmem:[#allocation1 + $0x11] ss:$2 sm:$0xff] %v707_v15  ;;  %v242_v20 = vmul.f32 %v236_v19, %v707_v15  ;;  %v251_v26 = vmul.f32 %v245_v23, %v707_v15  ;;  %v238_v27 = vsel %vm237_vm7, %v236_v19, %v235_v16  ;;  %v269_v48 = vmul.f32 %v263_v44, %v707_v15 }
  0x8e   : > { %v227_v18 = vmul.f32 %v225_v6, %v709_v17  ;;  %v241_v29 = vmul.f32 %v238_v27, %v709_v17  ;;  %v250_v36 = vmul.f32 %v247_v33, %v709_v17  ;;  %v260_v41 = vmul.f32 %v254_v37, %v707_v15 }
  0x8f   : > { %v256_v49 = vsel %vm255_vm9, %v254_v37, %v253_v34  ;;  %v268_v57 = vmul.f32 %v265_v54, %v709_v17  ;;  %v278_v63 = vmul.f32 %v272_v58, %v707_v15  ;;  %v277_v5 = vmul.f32 %v274_v3, %v709_v17 }
  0x90   : > { %280 = vst [vmem:[#allocation1] ss:$2 sm:$0xff] %v227_v18  ;;  %v259_v51 = vmul.f32 %v256_v49, %v709_v17 }
  0x94   : > { %v714_v21 = vld.sshfl [vmem:[#allocation1 + $0x10] sm:$0xff pattern:$0x75316420] }
  0x95   : > { %309 = vst [vmem:[#allocation1 + $0x10] ss:$2 sm:$0xff] %v242_v20  ;;  %v444_v20 = vld [vmem:[%s792_s2] sm:$0xff] }
  0x97   : > { %v716_v24 = vld.sshfl [vmem:[#allocation1] sm:$0xff pattern:$0x75316420]  ;;  %v718_v25 = vld.sshfl [vmem:[#allocation1 + $0x8] sm:$0xff pattern:$0x75316420] }
  0x98   : > { %288 = vst [vmem:[#allocation1 + $0x1] ss:$2 sm:$0xff] %v709_v17 }
  0x9c   : > { %v312_v28 = vld.sshfl [vmem:[#allocation1 + $0x10] sm:$0xff pattern:$0x75316420] }
  0x9d   : > { %317 = vrot.lane.b32.xlu0 %v312_v28, %s651_s5  ;;  %329 = vst [vmem:[#allocation1 + $0x11] ss:$2 sm:$0xff] %v251_v26 }
  0x9f   : > { %v723_v30 = vld.sshfl [vmem:[#allocation1] sm:$0xff pattern:$0x75316420]  ;;  %v725_v31 = vld.sshfl [vmem:[#allocation1 + $0x8] sm:$0xff pattern:$0x75316420] }
  0xa0   : > { %307 = vst [vmem:[#allocation1] ss:$2 sm:$0xff] %v241_v29  ;;  %v629_v32 = vpack.i.bf16 %v725_v31, %v723_v30 }
  0xa4   : > { %v729_v35 = vld.sshfl [vmem:[#allocation1 + $0x10] sm:$0xff pattern:$0x75316420] }
  0xa5   : > { %346 = vst [vmem:[#allocation1 + $0x10] ss:$2 sm:$0xff] %v707_v15 }
  0xa7   : > { %v310_v38 = vld.sshfl [vmem:[#allocation1] sm:$0xff pattern:$0x75316420]  ;;  %v311_v39 = vld.sshfl [vmem:[#allocation1 + $0x8] sm:$0xff pattern:$0x75316420] }
  0xa8   : > { %v599_v40 = vpack.i.bf16 %v311_v39, %v310_v38  ;;  %327 = vst [vmem:[#allocation1 + $0x1] ss:$2 sm:$0xff] %v250_v36 }
  0xaa   : > { %600 = vrot.lane.b32.xlu2 %v599_v40, %s651_s5 }
  0xac   : > { %v349_v42 = vld.sshfl [vmem:[#allocation1 + $0x10] sm:$0xff pattern:$0x75316420] }
  0xad   : > { %366 = vst [vmem:[#allocation1 + $0x11] ss:$2 sm:$0xff] %v260_v41 }
  0xaf   : > { %v330_v45 = vld.sshfl [vmem:[#allocation1] sm:$0xff pattern:$0x75316420]  ;;  %v331_v46 = vld.sshfl [vmem:[#allocation1 + $0x8] sm:$0xff pattern:$0x75316420] }
  0xb0   : > { %v604_v47 = vpack.i.bf16 %v331_v46, %v330_v45  ;;  %344 = vst [vmem:[#allocation1] ss:$2 sm:$0xff] %v709_v17 }
  0xb2   : > { %354 = vrot.lane.b32.xlu2 %v349_v42, %s652_s6  ;;  %605 = vrot.lane.b32.xlu1 %v604_v47, %s653_s7 }
  0xb4   : > { %v369_v50 = vld.sshfl [vmem:[#allocation1 + $0x10] sm:$0xff pattern:$0x75316420] }
  0xb5   : > { %385 = vst [vmem:[#allocation1 + $0x10] ss:$2 sm:$0xff] %v269_v48 }
  0xb7   : > { %v347_v52 = vld.sshfl [vmem:[#allocation1] sm:$0xff pattern:$0x75316420]  ;;  %v348_v53 = vld.sshfl [vmem:[#allocation1 + $0x8] sm:$0xff pattern:$0x75316420] }
  0xb8   : > { %364 = vst [vmem:[#allocation1 + $0x1] ss:$2 sm:$0xff] %v259_v51  ;;  %v609_v61 = vpack.i.bf16 %v348_v53, %v347_v52 }
  0xba   : > { %374 = vrot.lane.b32.xlu1 %v369_v50, %s654_s8 }
  0xbc   : > { %v388_v56 = vld.sshfl [vmem:[#allocation1 + $0x10] sm:$0xff pattern:$0x75316420] }
  0xbd   : > { %403 = vst [vmem:[#allocation1 + $0x11] ss:$2 sm:$0xff] %v707_v15 }
  0xbf   : > { %v367_v59 = vld.sshfl [vmem:[#allocation1] sm:$0xff pattern:$0x75316420]  ;;  %v368_v60 = vld.sshfl [vmem:[#allocation1 + $0x8] sm:$0xff pattern:$0x75316420] }
  0xc0   : > { %v614_v62 = vpack.i.bf16 %v368_v60, %v367_v59  ;;  %383 = vst [vmem:[#allocation1] ss:$2 sm:$0xff] %v268_v57 }
  0xc2   : > { %610 = vrot.lane.b32.xlu1 %v609_v61, %s652_s6  ;;  %615 = vrot.lane.b32.xlu0 %v614_v62, %s654_s8 }
  0xc4   : > { %v406_v0 = vld.sshfl [vmem:[#allocation1 + $0x10] sm:$0xff pattern:$0x75316420] }
  0xc5   : > { %422 = vst [vmem:[#allocation1 + $0x10] ss:$2 sm:$0xff] %v278_v63 }
  0xc7   : > { %v386_v1 = vld.sshfl [vmem:[#allocation1] sm:$0xff pattern:$0x75316420]  ;;  %v387_v2 = vld.sshfl [vmem:[#allocation1 + $0x8] sm:$0xff pattern:$0x75316420] }
  0xc8   : > { %401 = vst [vmem:[#allocation1 + $0x1] ss:$2 sm:$0xff] %v709_v17  ;;  %v619_v8 = vpack.i.bf16 %v387_v2, %v386_v1 }
  0xca   : > { %393 = vrot.lane.b32.xlu1 %v388_v56, %s655_s9  ;;  %411 = vrot.lane.b32.xlu0 %v406_v0, %s656_s10 }
  0xcc   : > { %v425_v4 = vld.sshfl [vmem:[#allocation1 + $0x10] sm:$0xff pattern:$0x75316420] }
  0xcd   : > { %430 = vrot.lane.b32.xlu2 %v425_v4, %s657_s11 }
  0xcf   : > { %v404_v6 = vld.sshfl [vmem:[#allocation1] sm:$0xff pattern:$0x75316420]  ;;  %v405_v7 = vld.sshfl [vmem:[#allocation1 + $0x8] sm:$0xff pattern:$0x75316420] }
  0xd0   : > { %420 = vst [vmem:[#allocation1] ss:$2 sm:$0xff] %v277_v5  ;;  %v624_v9 = vpack.i.bf16 %v405_v7, %v404_v6  ;;  %v443_v5 = vld [vmem:[%s791_s1] sm:$0xff] }
  0xd2   : > { %620 = vrot.lane.b32.xlu0 %v619_v8, %s655_s9 }
  0xd5   : > { %625 = vrot.lane.b32.xlu2 %v624_v9, %s656_s10 }
  0xd7   : > { %v424_v10 = vld.sshfl [vmem:[#allocation1 + $0x8] sm:$0xff pattern:$0x75316420]  ;;  %v423_v11 = vld.sshfl [vmem:[#allocation1] sm:$0xff pattern:$0x75316420] }
  0xd8   : > { %428 = vrot.lane.b32.xlu1 %v424_v10, %s657_s11 }
  0xda   : > { %426 = vrot.lane.b32.xlu0 %v423_v11, %s657_s11 }
  0xdd   : > { %337 = vrot.lane.b32.xlu2 %v729_v35, %s653_s7 }
  0xe0   : > { %298 = vrot.lane.b32.xlu1 %v714_v21, %s658_s12 }
  0xe2   : > { %630 = vrot.lane.b32.xlu0 %v629_v32, %s658_s12 }
  0xe5   : > { %447 = vperm.xlu2 %634, %v444_v20  }
 0x104   : > { %v749_v13 = vpop.permute.xlu2 %600 }
 0x105   : > { %v603_v38 = vunpack.i.h.bf16 %v749_v13  ;;  %v602_v51 = vunpack.i.l.bf16 %v749_v13 }
 0x107   : > { %v320_v61 = vsel %vm319_vm3, %v602_v51, %v603_v38 }
 0x10c   : > { %v355_v16 = vpop.permute.xlu2 %354 }
 0x10f   : > { %v318_v14 = vpop.permute.xlu0 %317 }
 0x110   : > { %v321_v57 = vsel %vm319_vm3, %v603_v38, %v318_v14 }
 0x124   : > { %v606_v12 = vpop.permute.xlu1 %605 }
 0x125   : > { %v608_v39 = vunpack.i.h.bf16 %v606_v12  ;;  %v607_v40 = vunpack.i.l.bf16 %v606_v12 }
 0x127   : > { %v431_v18 = vpop.permute.xlu2 %430  ;;  %v340_v58 = vsel %vm339_vm2, %v607_v40, %v608_v39 }
 0x128   : > { %v437_v62 = vsel %vm224_vm0, %v320_v61, %v340_v58 }
 0x12c   : > { %v375_v15 = vpop.permute.xlu1 %374 }
 0x12f   : > { %v626_v23 = vpop.permute.xlu2 %625 }
 0x130   : > { %v628_v32 = vunpack.i.h.bf16 %v626_v23  ;;  %v627_v33 = vunpack.i.l.bf16 %v626_v23 }
 0x132   : > { %v414_v50 = vsel %vm413_vm1, %v627_v33, %v628_v32 }
 0x134   : > { %v616_v17 = vpop.permute.xlu0 %615  ;;  %v611_v19 = vpop.permute.xlu1 %610 }
 0x135   : > { %v613_v29 = vunpack.i.h.bf16 %v611_v19  ;;  %v618_v30 = vunpack.i.h.bf16 %v616_v17  ;;  %v612_v34 = vunpack.i.l.bf16 %v611_v19  ;;  %v617_v35 = vunpack.i.l.bf16 %v616_v17 }
 0x137   : > { %v338_v41 = vpop.permute.xlu2 %337  ;;  %v358_v46 = vsel %vm356_vm14, %v613_v29, %v355_v16  ;;  %v378_v47 = vsel %vm376_vm15, %v618_v30, %v375_v15  ;;  %v357_v53 = vsel %vm356_vm14, %v612_v34, %v613_v29  ;;  %v377_v54 = vsel %vm376_vm15, %v617_v35, %v618_v30 }
 0x138   : > { %v341_v52 = vsel %vm339_vm2, %v608_v39, %v338_v41  ;;  %v440_v56 = vsel %vm224_vm0, %v358_v46, %v378_v47  ;;  %v439_v60 = vsel %vm224_vm0, %v357_v53, %v377_v54 }
 0x139   : > { %v438_v59 = vsel %vm224_vm0, %v321_v57, %v341_v52 }
 0x13c   : > { %v412_v21 = vpop.permute.xlu0 %411  ;;  %v394_v26 = vpop.permute.xlu1 %393 }
 0x13d   : > { %v415_v43 = vsel %vm413_vm1, %v628_v32, %v412_v21 }
 0x13f   : > { %v448_v8 = vpop.permute.xlu2 %447 }
 0x144   : > { %v621_v27 = vpop.permute.xlu0 %620 }
 0x145   : > { %v623_v28 = vunpack.i.h.bf16 %v621_v27  ;;  %v622_v31 = vunpack.i.l.bf16 %v621_v27 }
 0x147   : > { %v397_v37 = vsel %vm395_vm12, %v623_v28, %v394_v26  ;;  %v396_v45 = vsel %vm395_vm12, %v622_v31, %v623_v28 }
 0x148   : > { %v442_v49 = vsel %vm224_vm0, %v397_v37, %v415_v43  ;;  %v441_v55 = vsel %vm224_vm0, %v396_v45, %v414_v50 }
 0x14a   : > { %v429_v36 = vpop.permute.xlu1 %428 }
 0x14b   : > { %v434_v42 = vsel %vm432_vm13, %v429_v36, %v431_v18 }
 0x14c   : > { %569 = vmatpush.msk.msra.mxu1 %vm224_vm0, %v434_v42  ;;  %v427_v44 = vpop.permute.xlu0 %426 }
 0x14d   : > { %v433_v48 = vsel %vm432_vm13, %v427_v44, %v429_v36 }
 0x14e   : > { %567 = vmatpush.msk.msra.mxu0 %vm224_vm0, %v433_v48  ;;  %490 = vmatpush.msra.mxu1 %v442_v49 }
 0x150   : > { %470 = vmatpush.msra.mxu0 %v441_v55  ;;  %491 = vmatpush.msra.mxu1 %v440_v56 }
 0x152   : > { %492 = vmatpush.msra.mxu1 %v438_v59  ;;  %471 = vmatpush.msra.mxu0 %v439_v60  ;;  %v299_v2 = vpop.permute.xlu1 %298 }
 0x154   : > { %472 = vmatpush.msra.mxu0 %v437_v62  ;;  %v631_v63 = vpop.permute.xlu0 %630 }
 0x155   : > { %v633_v0 = vunpack.i.h.bf16 %v631_v63  ;;  %v632_v1 = vunpack.i.l.bf16 %v631_v63 }
 0x157   : > { %v301_v3 = vsel %vm300_vm4, %v632_v1, %v633_v0  ;;  %v302_v4 = vsel %vm300_vm4, %v633_v0, %v299_v2 }
 0x158   : > { %v435_v6 = vsel %vm224_vm0, %v716_v24, %v301_v3  ;;  %v436_v7 = vsel %vm224_vm0, %v718_v25, %v302_v4 }
 0x159   : > { %473 = vmatpush.msra.mxu0 %v435_v6  ;;  %493 = vmatpush.msra.mxu1 %v436_v7 }
 0x15a   : > { %568 = vmatmul.msk.f32.vlgmr.msra.gmra.mxu0 %vm450_vm5, %v443_v5  ;;  %570 = vmatmul.msk.f32.vlgmr.msra.gmra.mxu1 %vm450_vm5, %v443_v5 }
 0x1d7   : > { %v475_v9 = vpop.f32.mrf.mxu0  ;;  %v495_v10 = vpop.f32.mrf.mxu1 }
 0x1d8   : > { %v476_v11 = vadd.f32 %v475_v9, %v448_v8  ;;  %v496_v12 = vadd.f32 %v495_v10, %v448_v8 }
 0x1da   : > { %v498_v13 = vmax.f32 %v476_v11, 0.0  ;;  %v499_v14 = vmax.f32 %v496_v12, 0.0 }
 0x1dc   : > { %500 = vst [vmem:[%s197_s22] sm:$0xff] %v498_v13 }
 0x1dd   : > { %501 = vst [vmem:[%s197_s22 + $0x8] sm:$0xff] %v499_v14 }
 0x1de PF: > { %s14_s15 = sadd.s32 1, %s642_s15  }
 0x1df   : > { %p11_p4 = scmp.ge.s32.totalorder %s14_s15, 4  }
 0x1e1   :  { %13 = sbr.rel (!%p11_p4) target bundleno = 1 (0x1), region = 79 }

</bundles_post_ra>
